<compile_context>
chip_gen: v6e
topology: v6e:2x2x1
jax: 0.10.0
libtpu: 0.0.40
codegen_flags: <defaults>
</compile_context>

<pallas_src>
import functools

import jax
import jax.numpy as jnp
from jax import lax
from jax.experimental import pallas as pl
from jax.experimental.pallas import tpu as pltpu


def make_positional_table(num_hiddens: int, max_len: int = 100, dtype=jnp.float32):
    """Deterministic sinusoidal table P of shape (1, max_len, num_hiddens)."""
    assert num_hiddens % 2 == 0, "num_hiddens must be even (same constraint as the torch module)"
    pos = jnp.arange(max_len, dtype=jnp.float32).reshape(-1, 1)                  # (L, 1)
    div = jnp.power(10000.0,
                    jnp.arange(0, num_hiddens, 2, dtype=jnp.float32) / num_hiddens)  # (H/2,)
    x = pos / div                                                                # (L, H/2)
    P = jnp.zeros((max_len, num_hiddens), dtype=jnp.float32)
    P = P.at[:, 0::2].set(jnp.sin(x))
    P = P.at[:, 1::2].set(jnp.cos(x))
    return P[None].astype(dtype)                                                 # (1, L, H)


def _lowbias32(v):
    """Cheap uint32 -> uint32 mixing hash (pure VPU ops, portable)."""
    v = v ^ (v >> 16)
    v = v * jnp.uint32(0x7FEB352D)
    v = v ^ (v >> 15)
    v = v * jnp.uint32(0x846CA68B)
    v = v ^ (v >> 16)
    return v


def _posenc_kernel(seed_ref, x_ref, p_ref, o_ref, *, rate: float, training: bool, sh: int):
    # x_ref/o_ref blocks: (TB, TC); p_ref block: (1, TC) broadcast over batch rows.
    y = x_ref[...] + p_ref[...]
    if training and rate > 0.0:
        tb, tc = x_ref.shape
        col_tile = pl.program_id(0)
        batch_tile = pl.program_id(1)
        row0 = (batch_tile * tb).astype(jnp.uint32)
        col0 = (col_tile * tc).astype(jnp.uint32)
        row = lax.broadcasted_iota(jnp.uint32, (tb, tc), 0) + row0
        col = lax.broadcasted_iota(jnp.uint32, (tb, tc), 1) + col0
        ctr = row * jnp.uint32(sh) + col                       # globally unique per element
        seed_mix = _lowbias32(seed_ref[0].astype(jnp.uint32))
        bits = _lowbias32(ctr ^ seed_mix)
        # Integer-domain keep test: P(keep) = 1 - rate (no float convert / shift).
        threshold = min(int(rate * 4294967296.0), 4294967295)
        keep = bits >= jnp.uint32(threshold)
        scale = jnp.asarray(1.0 / (1.0 - rate), y.dtype)       # inverted dropout
        y = jnp.where(keep, y * scale, jnp.zeros((), y.dtype))
    o_ref[...] = y.astype(o_ref.dtype)


def _pick_batch_tile(b: int, max_rows: int = 1024) -> int:
    """Batch-row tile: full B when small, else a multiple of 8 dividing B."""
    if b <= max_rows:
        return b
    for tb in range(max_rows - max_rows % 8, 7, -8):
        if b % tb == 0:
            return tb
    return b


def _pick_col_tile(sh: int, tb: int, itemsize: int, max_tile_bytes: int = 2 << 20) -> int:
    """Lane tile: largest multiple of 128 dividing S*H with TB*TC*itemsize <= ~2 MiB."""
    if sh % 128 != 0:
        return sh                                   # full-extent block (legal; lanes padded)
    max_cols = max(128, (max_tile_bytes // (itemsize * max(tb, 1))) // 128 * 128)
    best = 128
    c = 128
    while c <= sh:
        if sh % c == 0 and c <= max_cols:
            best = c
        c += 128
    return best


def positional_encoding(x, P, *, dropout: float = 0.0, training: bool = False, seed: int = 0):
    """x: (B, S, H), P: (1, max_len, H).  Returns dropout(x + P[:, :S, :])."""
    B, S, H = x.shape
    assert P.shape[1] >= S and P.shape[2] == H
    SH = S * H

    # Lane-dense 2D slab: (B, S*H).  P is sliced/flattened and cast to x's dtype.
    x2 = x.reshape(B, SH)
    p2 = P[:, :S, :].reshape(1, SH).astype(x.dtype)

    TB = _pick_batch_tile(B)
    TC = _pick_col_tile(SH, TB, jnp.dtype(x.dtype).itemsize)
    grid = (SH // TC, B // TB)                      # batch is the inner grid axis

    kernel = functools.partial(_posenc_kernel,
                               rate=float(dropout), training=bool(training), sh=SH)
    seed_arr = jnp.asarray([seed], dtype=jnp.int32)

    out2 = pl.pallas_call(
        kernel,
        out_shape=jax.ShapeDtypeStruct((B, SH), x.dtype),
        grid_spec=pltpu.PrefetchScalarGridSpec(
            num_scalar_prefetch=1,
            grid=grid,
            in_specs=[
                pl.BlockSpec((TB, TC), lambda j, b, seed: (b, j)),  # x tile
                pl.BlockSpec((1, TC), lambda j, b, seed: (0, j)),   # P tile: constant over inner axis
            ],
            out_specs=pl.BlockSpec((TB, TC), lambda j, b, seed: (b, j)),
        ),
        compiler_params=pltpu.CompilerParams(
            dimension_semantics=("parallel", "parallel"),           # no reduction anywhere
        ),
    )(seed_arr, x2, p2)
    return out2.reshape(B, S, H)


if __name__ == "__main__":
    B, S, H = 2, 8, 32
    max_len = 100
    dropout_rate = 0.1  # module __init__ arg

    key = jax.random.PRNGKey(0)
    x = jax.random.normal(key, (B, S, H), dtype=jnp.float32)
    P = make_positional_table(H, max_len)

    # Eval-mode forward (dropout = identity), matches PyTorch module.eval().
    out = positional_encoding(x, P, dropout=dropout_rate, training=False)
    out = jax.block_until_ready(out)
    ref = x + P[:, :S, :]
    assert jnp.allclose(out, ref, atol=1e-6, rtol=1e-6), "eval-mode mismatch vs reference"

    # Training-mode forward (in-kernel hash-PRNG dropout).
    out_train = positional_encoding(x, P, dropout=dropout_rate, training=True, seed=42)
    out_train = jax.block_until_ready(out_train)
    scaled = ref / (1.0 - dropout_rate)
    ok = jnp.all(jnp.isclose(out_train, 0.0, atol=1e-6)
                 | jnp.isclose(out_train, scaled, atol=1e-5, rtol=1e-5))
    assert bool(ok), "training-mode outputs must be 0 or (x+P)/(1-rate)"

    print("KERNEL_OK")
</pallas_src>

<mosaic_0001>
module attributes {stable_mosaic.version = 11 : i64} {
  func.func @_posenc_kernel(%arg0: i32, %arg1: i32, %arg2: memref<1xi32, #tpu.memory_space<smem>>, %arg3: memref<2x256xf32, #tpu.memory_space<vmem>>, %arg4: memref<1x256xf32, #tpu.memory_space<vmem>>, %arg5: memref<2x256xf32, #tpu.memory_space<vmem>>) attributes {dimension_semantics = [#tpu.dimension_semantics<parallel>, #tpu.dimension_semantics<parallel>], iteration_bounds = array<i64: 1, 1>, scalar_prefetch = 1 : i64, scratch_operands = 0 : i64, tpu.core_type = #tpu.core_type<tc>, window_params = [{transform_indices = @transform_0, window_bounds = array<i64: 2, 256>}, {transform_indices = @transform_1, window_bounds = array<i64: 1, 256>}, {transform_indices = @transform_2, window_bounds = array<i64: 2, 256>}]} {
    %c0 = arith.constant 0 : index
    %c0_0 = arith.constant 0 : index
    %0 = vector.load %arg3[%c0, %c0_0] : memref<2x256xf32, #tpu.memory_space<vmem>>, vector<2x256xf32>
    %c0_1 = arith.constant 0 : index
    %c0_2 = arith.constant 0 : index
    %1 = vector.load %arg4[%c0_1, %c0_2] : memref<1x256xf32, #tpu.memory_space<vmem>>, vector<1x256xf32>
    %2 = vector.broadcast %1 : vector<1x256xf32> to vector<2x256xf32>
    %3 = arith.addf %0, %2 : vector<2x256xf32>
    %c0_3 = arith.constant 0 : index
    %c0_4 = arith.constant 0 : index
    %4 = vector.load %arg5[%c0_3, %c0_4] : memref<2x256xf32, #tpu.memory_space<vmem>>, vector<2x256xf32>
    tpu.vector_store %arg5[%c0_3, %c0_4], %3 {strides = array<i32>} : memref<2x256xf32, #tpu.memory_space<vmem>>, vector<2x256xf32>,
    return
  }
  func.func @transform_0(%arg0: i32, %arg1: i32, %arg2: memref<1xi32, #tpu.memory_space<smem>>) -> (i32, i32) {
    %c0_i32 = arith.constant 0 : i32
    return %arg1, %arg0 : i32, i32
  }
  func.func @transform_1(%arg0: i32, %arg1: i32, %arg2: memref<1xi32, #tpu.memory_space<smem>>) -> (i32, i32) {
    %c0_i32 = arith.constant 0 : i32
    %c0_i32_0 = arith.constant 0 : i32
    return %c0_i32, %arg0 : i32, i32
  }
  func.func @transform_2(%arg0: i32, %arg1: i32, %arg2: memref<1xi32, #tpu.memory_space<smem>>) -> (i32, i32) {
    %c0_i32 = arith.constant 0 : i32
    return %arg1, %arg0 : i32, i32
  }
}

</mosaic_0001>

<bundles_post_ra>
// kernel: tpu_custom_call.1
= control target key start
LH: loop header
LB: loop body
LE: loop exit
PB: predicated region body
PF: predicated region fallthrough
CT: control target
= control target key end

     0   :  { %9 = vsyncpa [#allocation5], 0  ;;  %s142_s0 = inlined_call_operand.<no memory space> [shape: s32[1], index: 0, kind: input, shape index: {}]   ;;  %s143_s1 = inlined_call_operand.hbm [shape: f32[2,256], index: 1, kind: input, shape index: {}]   ;;  %s144_s2 = inlined_call_operand.vmem [shape: f32[1,256], index: 2, kind: input, shape index: {}]   ;;  %s145_s3 = inlined_call_operand.hbm [shape: f32[2,256], index: 3, kind: output, shape index: {}]  }
   0x1   :  { %10 = vsyncpa [#allocation6], 0  ;;  %s110_s12 = smov [#allocation4]  }
   0x2   :  { %s17_s13 = sshll.u32 %s110_s12, 4  ;;  %s18_s13 = int_to_ptr.vmem [resolvable:$true] %s17_s13 }
   0x3   :  { %s74_s14 = scalar_lea.vmem %s18_s13, 64  ;;  %p79_p1 = scmp.lt.s32.totalorder %s18_s13, %s18_s13 }
   0x4   :  { %p75_p0 = scmp.ne.s32.totalorder %s18_s13, %s74_s14  ;;  %p80_p2 = scmp.lt.s32.totalorder %s74_s14, %s74_s14 }
   0x6   :  { %p81_p3 = por %p80_p2, %p79_p1 }
   0x8   :  { %p82_p4 = pnand %p81_p3, %p75_p0 }
   0xa   :  { %85 = shalt.err (!%p82_p4)
}
   0xb   :  { %20 = dma.hbm_to_vmem [thread:$0]  %s143_s1, 64, %s18_s13, [#allocation5]  }
   0xc   :  { %106 = dma.done.wait [#allocation5], 64  }
   0xd   :  { %107 = vsyncadd [#allocation5], 4294967232  ;;  %v29_v0 = vlaneseq  ;;  %v111_v1 = vmov 1983009808   ;;  %v27_v7 = vld [vmem:[%s144_s2] sm:$0x3] }
   0xe   :  { %v39_v2 = vunpack.c.l.s4 %v111_v1  ;;  %v26_v12 = vld [vmem:[#allocation4] sm:$0xf]  ;;  %s112_s18 = smov [#allocation7]  }
   0xf   :  { %v30_v3 = vshrl.u32 %v29_v0, 7  ;;  %s54_s1 = sshll.u32 %s112_s18, 4  ;;  %s55_s1 = int_to_ptr.vmem [resolvable:$true] %s54_s1 }
  0x10   :  { %v40_v6 = vunpack.c.0.s8 %v39_v2  ;;  %s86_s19 = scalar_lea.vmem %s55_s1, 64  ;;  %p91_p6 = scmp.lt.s32.totalorder %s55_s1, %s55_s1 }
  0x11   :  { %v31_v4 = vsub.s32 0, %v30_v3  ;;  %v35_v5 = vsub.s32 1, %v30_v3  ;;  %p87_p5 = scmp.ne.s32.totalorder %s55_s1, %s86_s19  ;;  %p92_p7 = scmp.lt.s32.totalorder %s86_s19, %s86_s19 }
  0x12   :  { %v43_v10 = vsub.s32 %v40_v6, %v30_v3 }
  0x13   :  { %v32_v8 = vrot.slane %v27_v7, %v31_v4  ;;  %v36_v9 = vrot.slane %v27_v7, %v35_v5  ;;  %p93_p8 = por %p92_p7, %p91_p6 }
  0x15   :  { %v37_v11 = vcombine.low %v32_v8, %v36_v9  ;;  %p94_p9 = pnand %p93_p8, %p87_p5 }
  0x17   :  { %v44_v13 = vrot.slane %v37_v11, %v43_v10 }
  0x19   :  { %v46_v14 = vadd.f32 %v44_v13, %v26_v12 }
  0x1b   :  { %47 = vst [vmem:[#allocation7] sm:$0xf] %v46_v14 }
  0x1c   :  { %97 = shalt.err (!%p94_p9)
}
  0x1d   :  { %57 = dma.vmem_to_hbm [thread:$0]  %s55_s1, 64, %s145_s3, [#allocation6]  }
  0x1e   :  { %108 = dma.done.wait [#allocation6], 64  }
  0x1f   :  { %109 = vsyncadd [#allocation6], 4294967232 }
  0x20   :  { %61 = vsyncpa [#allocation5], 1 }
  0x21   :  { %62 = vsyncpa [#allocation6], 1 }

</bundles_post_ra>
